<compile_context>
chip_gen: v5e
topology: v5e:2x2
jax: 0.10.0
libtpu: 0.0.40
codegen_flags: <defaults>
</compile_context>

<pallas_src>
import math

import jax
import jax.numpy as jnp
from jax.experimental import pallas as pl
from jax.experimental.pallas import tpu as pltpu


def _critic_kernel(x_ref, w1_ref, b1_ref, w2_ref, b2_ref, o_ref):
    # Layer 1 on the MXU: in-kernel bf16 cast of the x tile, bf16 W1, f32 acc.
    x = x_ref[...].astype(jnp.bfloat16)
    h = jnp.dot(x, w1_ref[...], preferred_element_type=jnp.float32)
    h = jnp.maximum(h + b1_ref[...], 0.0)            # bias + ReLU on the VPU
    # TODO(synk): nn.Dropout is identity at inference; training-mode dropout
    # (pltpu.prng_seed + pltpu.prng_random_bits mask, scaled by 1/(1-p)) is not
    # implemented here.
    # Layer 2 (single output unit): VPU multiply + XLU lane reduction instead
    # of an MXU pass that would use only 1 of 128/256 output columns. Kept in
    # f32 (v5e has no bf16 VPU path, and it preserves accumulation precision).
    v = jnp.sum(h * w2_ref[...], axis=-1)             # (TB,)
    v = v + b2_ref[0]                                  # scalar bias from SMEM
    # Lane-dense store: batch runs along the lane axis of the (1, TB) tile.
    o_ref[...] = v[None, :].astype(o_ref.dtype)


def _round_up(x, m):
    return ((x + m - 1) // m) * m


def _cdiv(a, b):
    return -(-a // b)


def _usable_vmem_bytes():
    """Generation-aware usable VMEM (leave ~15% for compiler scratch)."""
    try:
        cap = int(pltpu.get_tpu_info().vmem_capacity_bytes)
    except Exception:  # query unavailable -> assume the tightest generation (v7x)
        cap = 64 << 20
    return int(cap * 0.85)


def _per_tile_bytes(tb, d):
    return (
        2 * tb * d * 4        # x tiles (f32), double-buffered
        + tb * d * 4          # h intermediate (f32)
        + 2 * 8 * tb * 4      # out tiles (f32, sublane-padded to 8 rows), dbl-buf
    )


def _resident_bytes(d, weight_buffers):
    return (
        weight_buffers * d * d * 2      # W1, bf16, VMEM-resident
        + weight_buffers * 2 * 8 * d * 4  # b1 + w2 rows (f32, sublane-padded)
        + (2 << 20)                     # relayout / compiler scratch headroom
    )


def _build_critic_call(D, tb, n_tiles, vmem_bytes, weight_buffer_count):
    """Construct the pallas_call; weight_buffer_count=None -> default buffering."""
    if weight_buffer_count is None:
        def wspec(shape):
            return pl.BlockSpec(shape, lambda i: (0, 0))
    else:
        mode = pl.Buffered(weight_buffer_count)

        def wspec(shape):
            return pl.BlockSpec(shape, lambda i: (0, 0), pipeline_mode=mode)

    return pl.pallas_call(
        _critic_kernel,
        out_shape=jax.ShapeDtypeStruct((1, n_tiles * tb), jnp.float32),
        grid=(n_tiles,),
        in_specs=[
            pl.BlockSpec((tb, D), lambda i: (i, 0)),            # x: pipelined tiles
            wspec((D, D)),                                      # W1: resident
            wspec((1, D)),                                      # b1: resident
            wspec((1, D)),                                      # w2 row: resident
            pl.BlockSpec(memory_space=pltpu.MemorySpace.SMEM),  # b2: scalar in SMEM
        ],
        out_specs=pl.BlockSpec((1, tb), lambda i: (0, i)),      # lane-dense values
        compiler_params=pltpu.CompilerParams(
            dimension_semantics=("parallel",),  # shard batch tiles across TCs (v7x)
            vmem_limit_bytes=vmem_bytes,
        ),
    )


def critic_forward(state, w1, b1, w2, b2, *, tb_cap=512):
    """state: (B, D) float32. Returns value estimates, shape (B,) float32.

    Weight layout: w1 is (D, D) bf16 stored as (in, out); b1 is (1, D) f32;
    w2 is the second Linear's weight stored as a (1, D) f32 row; b2 is (1,) f32.
    """
    B, D = state.shape
    usable = _usable_vmem_bytes()

    # Largest batch tile (multiple of 128, <= tb_cap) whose working set fits.
    tb_max = max(128, tb_cap)
    while tb_max > 128 and _resident_bytes(D, 1) + _per_tile_bytes(tb_max, D) > usable:
        tb_max //= 2

    if B <= tb_max:
        # One full-array block: no padding, no masked tail, no per-step overhead.
        # (Also keeps a single core fetching the resident W1 on v7x when the
        # weight stream, not the batch, dominates HBM traffic.)
        tb, n_tiles = B, 1
    else:
        tb = tb_max                       # multiple of 128 -> lane-dense out blocks
        n_tiles = _cdiv(B, tb)            # >= 2 -> both v7x TensorCores engaged

    # TODO(synk): once bf16 W1 alone no longer fits usable VMEM (D ~ 5-6k on
    # v7x), add an "arbitrary" K grid axis tiling W1 with a f32 accumulator and
    # pl.when init/finalize.
    vmem_bytes = int(
        min(max(_resident_bytes(D, 1) + _per_tile_bytes(tb, D), 1 << 20), usable)
    )

    try:
        out = _build_critic_call(D, tb, n_tiles, vmem_bytes, 1)(
            state, w1, b1, w2, b2
        )
    except Exception:
        # Fallback: default double-buffering for the resident weights (known-good
        # configuration) if Buffered(1) is rejected by this compiler version.
        vmem_fb = int(
            min(max(_resident_bytes(D, 2) + _per_tile_bytes(tb, D), 1 << 20), usable)
        )
        out = _build_critic_call(D, tb, n_tiles, vmem_fb, None)(
            state, w1, b1, w2, b2
        )

    # PyTorch .squeeze(): (B, 1) -> (B,). Also drops the masked tail lanes.
    return out[0, :B]


def init_critic_params(key, rnn_dim):
    """nn.Linear-style init (uniform +-1/sqrt(fan_in)).

    W1 stored pre-transposed (in, out) in bf16; W2 stored as a (1, D) f32 row.
    """
    k1, k2, k3, k4 = jax.random.split(key, 4)
    bound = 1.0 / math.sqrt(rnn_dim)
    w1 = jax.random.uniform(k1, (rnn_dim, rnn_dim), jnp.float32, -bound, bound)
    w1 = w1.astype(jnp.bfloat16)
    b1 = jax.random.uniform(k2, (1, rnn_dim), jnp.float32, -bound, bound)
    w2 = jax.random.uniform(k3, (1, rnn_dim), jnp.float32, -bound, bound)
    b2 = jax.random.uniform(k4, (1,), jnp.float32, -bound, bound)
    return w1, b1, w2, b2


if __name__ == "__main__":
    batch = 8
    rnn_dim = 128  # args.rnn_dim

    key = jax.random.PRNGKey(0)
    k_x, k_p = jax.random.split(key)
    state = jax.random.normal(k_x, (batch, rnn_dim), jnp.float32)
    w1, b1, w2, b2 = init_critic_params(k_p, rnn_dim)

    values = critic_forward(state, w1, b1, w2, b2)
    values = jax.block_until_ready(values)

    # Reference in plain JAX with identical precision choices (bf16 x/W1 matmul
    # with f32 accumulate); dropout is identity in eval mode.
    h_ref = jnp.maximum(
        jnp.dot(state.astype(jnp.bfloat16), w1,
                preferred_element_type=jnp.float32) + b1,
        0.0,
    )
    ref = jnp.sum(h_ref * w2, axis=-1) + b2[0]

    assert values.shape == (batch,), values.shape
    assert jnp.allclose(values, ref, atol=1e-4, rtol=1e-4), (values, ref)
    print("KERNEL_OK")
</pallas_src>

<mosaic_0001>
module attributes {stable_mosaic.version = 11 : i64} {
  func.func @_critic_kernel(%arg0: i32, %arg1: memref<8x128xf32, #tpu.memory_space<vmem>>, %arg2: memref<128x128xbf16, #tpu.memory_space<vmem>>, %arg3: memref<1x128xf32, #tpu.memory_space<vmem>>, %arg4: memref<1x128xf32, #tpu.memory_space<vmem>>, %arg5: memref<1xf32, #tpu.memory_space<smem>>, %arg6: memref<1x8xf32, #tpu.memory_space<vmem>>) attributes {dimension_semantics = [#tpu.dimension_semantics<parallel>], iteration_bounds = array<i64: 1>, scalar_prefetch = 0 : i64, scratch_operands = 0 : i64, tpu.core_type = #tpu.core_type<tc>, window_params = [{transform_indices = @transform_0, window_bounds = array<i64: 8, 128>}, {pipeline_mode = #tpu.pipeline_mode<synchronous>, transform_indices = @transform_1, window_bounds = array<i64: 128, 128>}, {pipeline_mode = #tpu.pipeline_mode<synchronous>, transform_indices = @transform_2, window_bounds = array<i64: 1, 128>}, {pipeline_mode = #tpu.pipeline_mode<synchronous>, transform_indices = @transform_3, window_bounds = array<i64: 1, 128>}, {transform_indices = @transform_4, window_bounds = array<i64: 1>}, {transform_indices = @transform_5, window_bounds = array<i64: 1, 8>}]} {
    %c0 = arith.constant 0 : index
    %c0_0 = arith.constant 0 : index
    %0 = vector.load %arg1[%c0, %c0_0] : memref<8x128xf32, #tpu.memory_space<vmem>>, vector<8x128xf32>
    %1 = arith.truncf %0 : vector<8x128xf32> to vector<8x128xbf16>
    %c0_1 = arith.constant 0 : index
    %c0_2 = arith.constant 0 : index
    %2 = vector.load %arg2[%c0_1, %c0_2] : memref<128x128xbf16, #tpu.memory_space<vmem>>, vector<128x128xbf16>
    %cst = arith.constant dense<0.000000e+00> : vector<8x128xf32>
    %3 = tpu.matmul %1, %2, %cst {dimension_numbers = #tpu.dot_dimension_numbers<[1], [0], [0], [1], [0, 0, 1, 1], [], []>} : vector<8x128xbf16>, vector<128x128xbf16>, vector<8x128xf32> -> vector<8x128xf32>
    %c0_3 = arith.constant 0 : index
    %c0_4 = arith.constant 0 : index
    %4 = vector.load %arg3[%c0_3, %c0_4] : memref<1x128xf32, #tpu.memory_space<vmem>>, vector<1x128xf32>
    %5 = vector.broadcast %4 : vector<1x128xf32> to vector<8x128xf32>
    %6 = arith.addf %3, %5 : vector<8x128xf32>
    %cst_5 = arith.constant 0.000000e+00 : f32
    %7 = vector.broadcast %cst_5 : f32 to vector<8x128xf32>
    %8 = arith.maximumf %6, %7 : vector<8x128xf32>
    %c0_6 = arith.constant 0 : index
    %c0_7 = arith.constant 0 : index
    %9 = vector.load %arg4[%c0_6, %c0_7] : memref<1x128xf32, #tpu.memory_space<vmem>>, vector<1x128xf32>
    %10 = vector.broadcast %9 : vector<1x128xf32> to vector<8x128xf32>
    %11 = arith.mulf %8, %10 : vector<8x128xf32>
    %cst_8 = arith.constant dense<0.000000e+00> : vector<8xf32>
    %12 = vector.multi_reduction <add>, %11, %cst_8 [1] : vector<8x128xf32> to vector<8xf32>
    %c0_9 = arith.constant 0 : index
    %13 = memref.load %arg5[%c0_9] : memref<1xf32, #tpu.memory_space<smem>>
    %14 = vector.broadcast %13 : f32 to vector<8xf32>
    %15 = arith.addf %12, %14 : vector<8xf32>
    %16 = vector.shape_cast %15 : vector<8xf32> to vector<1x8xf32>
    %c0_10 = arith.constant 0 : index
    %c0_11 = arith.constant 0 : index
    %17 = vector.load %arg6[%c0_10, %c0_11] : memref<1x8xf32, #tpu.memory_space<vmem>>, vector<1x8xf32>
    tpu.vector_store %arg6[%c0_10, %c0_11], %16 {strides = array<i32>} : memref<1x8xf32, #tpu.memory_space<vmem>>, vector<1x8xf32>,
    return
  }
  func.func @transform_0(%arg0: i32) -> (i32, i32) {
    %c0_i32 = arith.constant 0 : i32
    %c0_i32_0 = arith.constant 0 : i32
    return %arg0, %c0_i32 : i32, i32
  }
  func.func @transform_1(%arg0: i32) -> (i32, i32) {
    %c0_i32 = arith.constant 0 : i32
    %c0_i32_0 = arith.constant 0 : i32
    %c0_i32_1 = arith.constant 0 : i32
    return %c0_i32, %c0_i32_0 : i32, i32
  }
  func.func @transform_2(%arg0: i32) -> (i32, i32) {
    %c0_i32 = arith.constant 0 : i32
    %c0_i32_0 = arith.constant 0 : i32
    %c0_i32_1 = arith.constant 0 : i32
    return %c0_i32, %c0_i32_0 : i32, i32
  }
  func.func @transform_3(%arg0: i32) -> (i32, i32) {
    %c0_i32 = arith.constant 0 : i32
    %c0_i32_0 = arith.constant 0 : i32
    %c0_i32_1 = arith.constant 0 : i32
    return %c0_i32, %c0_i32_0 : i32, i32
  }
  func.func @transform_4(%arg0: i32) -> i32 {
    %c0_i32 = arith.constant 0 : i32
    %c0_i32_0 = arith.constant 0 : i32
    return %c0_i32 : i32
  }
  func.func @transform_5(%arg0: i32) -> (i32, i32) {
    %c0_i32 = arith.constant 0 : i32
    %c0_i32_0 = arith.constant 0 : i32
    return %c0_i32, %arg0 : i32, i32
  }
}

module attributes {stable_mosaic.version = 11 : i64} {
  func.func @_critic_kernel(%arg0: i32, %arg1: memref<8x128xf32, #tpu.memory_space<vmem>>, %arg2: memref<128x128xbf16, #tpu.memory_space<vmem>>, %arg3: memref<1x128xf32, #tpu.memory_space<vmem>>, %arg4: memref<1x128xf32, #tpu.memory_space<vmem>>, %arg5: memref<1xf32, #tpu.memory_space<smem>>, %arg6: memref<1x8xf32, #tpu.memory_space<vmem>>) attributes {dimension_semantics = [#tpu.dimension_semantics<parallel>], iteration_bounds = array<i64: 1>, scalar_prefetch = 0 : i64, scratch_operands = 0 : i64, tpu.core_type = #tpu.core_type<tc>, window_params = [{transform_indices = @transform_0, window_bounds = array<i64: 8, 128>}, {pipeline_mode = #tpu.pipeline_mode<synchronous>, transform_indices = @transform_1, window_bounds = array<i64: 128, 128>}, {pipeline_mode = #tpu.pipeline_mode<synchronous>, transform_indices = @transform_2, window_bounds = array<i64: 1, 128>}, {pipeline_mode = #tpu.pipeline_mode<synchronous>, transform_indices = @transform_3, window_bounds = array<i64: 1, 128>}, {transform_indices = @transform_4, window_bounds = array<i64: 1>}, {transform_indices = @transform_5, window_bounds = array<i64: 1, 8>}]} {
    %c0 = arith.constant 0 : index
    %c0_0 = arith.constant 0 : index
    %0 = vector.load %arg1[%c0, %c0_0] : memref<8x128xf32, #tpu.memory_space<vmem>>, vector<8x128xf32>
    %1 = arith.truncf %0 : vector<8x128xf32> to vector<8x128xbf16>
    %c0_1 = arith.constant 0 : index
    %c0_2 = arith.constant 0 : index
    %2 = vector.load %arg2[%c0_1, %c0_2] : memref<128x128xbf16, #tpu.memory_space<vmem>>, vector<128x128xbf16>
    %cst = arith.constant dense<0.000000e+00> : vector<8x128xf32>
    %3 = tpu.matmul %1, %2, %cst {dimension_numbers = #tpu.dot_dimension_numbers<[1], [0], [0], [1], [0, 0, 1, 1], [], []>} : vector<8x128xbf16>, vector<128x128xbf16>, vector<8x128xf32> -> vector<8x128xf32>
    %c0_3 = arith.constant 0 : index
    %c0_4 = arith.constant 0 : index
    %4 = vector.load %arg3[%c0_3, %c0_4] : memref<1x128xf32, #tpu.memory_space<vmem>>, vector<1x128xf32>
    %5 = vector.broadcast %4 : vector<1x128xf32> to vector<8x128xf32>
    %6 = arith.addf %3, %5 : vector<8x128xf32>
    %cst_5 = arith.constant 0.000000e+00 : f32
    %7 = vector.broadcast %cst_5 : f32 to vector<8x128xf32>
    %8 = arith.maximumf %6, %7 : vector<8x128xf32>
    %c0_6 = arith.constant 0 : index
    %c0_7 = arith.constant 0 : index
    %9 = vector.load %arg4[%c0_6, %c0_7] : memref<1x128xf32, #tpu.memory_space<vmem>>, vector<1x128xf32>
    %10 = vector.broadcast %9 : vector<1x128xf32> to vector<8x128xf32>
    %11 = arith.mulf %8, %10 : vector<8x128xf32>
    %cst_8 = arith.constant dense<0.000000e+00> : vector<8xf32>
    %12 = vector.multi_reduction <add>, %11, %cst_8 [1] : vector<8x128xf32> to vector<8xf32>
    %c0_9 = arith.constant 0 : index
    %13 = memref.load %arg5[%c0_9] : memref<1xf32, #tpu.memory_space<smem>>
    %14 = vector.broadcast %13 : f32 to vector<8xf32>
    %15 = arith.addf %12, %14 : vector<8xf32>
    %16 = vector.shape_cast %15 : vector<8xf32> to vector<1x8xf32>
    %c0_10 = arith.constant 0 : index
    %c0_11 = arith.constant 0 : index
    %17 = vector.load %arg6[%c0_10, %c0_11] : memref<1x8xf32, #tpu.memory_space<vmem>>, vector<1x8xf32>
    tpu.vector_store %arg6[%c0_10, %c0_11], %16 {strides = array<i32>} : memref<1x8xf32, #tpu.memory_space<vmem>>, vector<1x8xf32>,
    return
  }
  func.func @transform_0(%arg0: i32) -> (i32, i32) {
    %c0_i32 = arith.constant 0 : i32
    %c0_i32_0 = arith.constant 0 : i32
    return %arg0, %c0_i32 : i32, i32
  }
  func.func @transform_1(%arg0: i32) -> (i32, i32) {
    %c0_i32 = arith.constant 0 : i32
    %c0_i32_0 = arith.constant 0 : i32
    %c0_i32_1 = arith.constant 0 : i32
    return %c0_i32, %c0_i32_0 : i32, i32
  }
  func.func @transform_2(%arg0: i32) -> (i32, i32) {
    %c0_i32 = arith.constant 0 : i32
    %c0_i32_0 = arith.constant 0 : i32
    %c0_i32_1 = arith.constant 0 : i32
    return %c0_i32, %c0_i32_0 : i32, i32
  }
  func.func @transform_3(%arg0: i32) -> (i32, i32) {
    %c0_i32 = arith.constant 0 : i32
    %c0_i32_0 = arith.constant 0 : i32
    %c0_i32_1 = arith.constant 0 : i32
    return %c0_i32, %c0_i32_0 : i32, i32
  }
  func.func @transform_4(%arg0: i32) -> i32 {
    %c0_i32 = arith.constant 0 : i32
    %c0_i32_0 = arith.constant 0 : i32
    return %c0_i32 : i32
  }
  func.func @transform_5(%arg0: i32) -> (i32, i32) {
    %c0_i32 = arith.constant 0 : i32
    %c0_i32_0 = arith.constant 0 : i32
    return %c0_i32, %arg0 : i32, i32
  }
}

</mosaic_0001>

<bundles_post_ra>
// kernel: tpu_custom_call.1
= control target key start
LH: loop header
LB: loop body
LE: loop exit
PB: predicated region body
PF: predicated region fallthrough
CT: control target
= control target key end

     0   :  { %11 = vsyncpa [#allocation4], 0  ;;  %s349_s0 = inlined_call_operand.hbm [shape: f32[8,128], index: 0, kind: input, shape index: {}]   ;;  %s350_s1 = inlined_call_operand.hbm [shape: bf16[128,128], index: 1, kind: input, shape index: {}]   ;;  %s351_s2 = inlined_call_operand.vmem [shape: f32[1,128], index: 2, kind: input, shape index: {}]   ;;  %s352_s3 = inlined_call_operand.vmem [shape: f32[1,128], index: 3, kind: input, shape index: {}]   ;;  %s353_s4 = inlined_call_operand.<no memory space> [shape: f32[1], index: 4, kind: input, shape index: {}]   ;;  %s354_s5 = inlined_call_operand.hbm [shape: f32[1,8], index: 5, kind: output, shape index: {}]  }
   0x1   :  { %12 = vsyncpa [#allocation7], 0 }
   0x2   :  { %13 = vsyncpa [#allocation5], 0  ;;  %s19_s20 = sshll.u32 %s349_s0, 4  ;;  %s296_s21 = smov [#allocation3]   ;;  %s20_s20 = int_to_ptr.hbm [resolvable:$true] %s19_s20 }
   0x3   :  { %s21_s22 = sshll.u32 %s296_s21, 4  ;;  %s29_s25 = sshll.u32 %s350_s1, 4  ;;  %s22_s22 = int_to_ptr.vmem [resolvable:$true] %s21_s22  ;;  %s30_s25 = int_to_ptr.hbm [resolvable:$true] %s29_s25 }
   0x4   :  { %24 = dma.hbm_to_vmem [thread:$0]  %s20_s20, 128, %s22_s22, [#allocation4]  }
   0x5   :  { %s297_s26 = smov [#allocation6]   ;;  %s298_s28 = smov 64  }
   0x6   :  { %s31_s27 = sshll.u32 %s297_s26, 4  ;;  %s299_s29 = smov 4   ;;  %s32_s27 = int_to_ptr.vmem [resolvable:$true] %s31_s27 }
   0x7   :  { %37 = dma.hbm_to_vmem [thread:$0]  %s30_s25, 1024, %s32_s27, [#allocation7], %s298_s28, %s298_s28, %s299_s29  }
   0x8   :  { %290 = dma.done.wait [#allocation4], 128  }
   0x9   :  { %291 = vsyncadd [#allocation4], 4294967168 }
   0xa   :  { %292 = dma.done.wait [#allocation7], 1024  }
   0xb   :  { %293 = vsyncadd [#allocation7], 4294966272  ;;  %v210_v0 = vld [vmem:[#allocation6 + $0x38] sm:$0xff]  ;;  %v209_v1 = vld [vmem:[#allocation6 + $0x30] sm:$0xff]  ;;  %v147_v17 = vlaneseq  ;;  %v144_v18 = vstv %s353_s4  ;;  %s300_s9 = smov [#allocation8]   ;;  %s160_s12 = sshll.u32 %s354_s5, 4  ;;  %s161_s12 = int_to_ptr.hbm [resolvable:$true] %s160_s12 }
   0xc   :  { %122 = vmatpush.bf16.msra.mxu0 %v210_v0  ;;  %v208_v2 = vld [vmem:[#allocation6 + $0x28] sm:$0xff]  ;;  %v207_v3 = vld [vmem:[#allocation6 + $0x20] sm:$0xff]  ;;  %v206_v4 = vld [vmem:[#allocation6 + $0x18] sm:$0xff]  ;;  %s158_s10 = sshll.u32 %s300_s9, 4  ;;  %vm151_vm0 = vcmask 57344   ;;  %s159_s10 = int_to_ptr.vmem [resolvable:$true] %s158_s10 }
   0xd   :  { %v205_v5 = vld [vmem:[#allocation6 + $0x10] sm:$0xff]  ;;  %v204_v6 = vld [vmem:[#allocation6 + $0x8] sm:$0xff]  ;;  %v203_v7 = vld [vmem:[#allocation6] sm:$0xff]  ;;  %v148_v19 = vand.u32 127, %v147_v17 }
   0xe   :  { %v52_v8 = vld [vmem:[#allocation3] sm:$0xff] }
   0xf   :  { %v53_v9 = vpack.c.bf16 %v52_v8, %v52_v8  ;;  %v216_v10 = vld [vmem:[%s351_s2] ss:$0 sm:$0xff] }
  0x10   :  { %123 = vmatpush.bf16.msra.mxu0 %v209_v1  ;;  %v217_v13 = vld [vmem:[%s352_s3] ss:$0 sm:$0xff] }
  0x14   :  { %124 = vmatpush.bf16.msra.mxu0 %v208_v2 }
  0x18   :  { %125 = vmatpush.bf16.msra.mxu0 %v207_v3 }
  0x1c   :  { %126 = vmatpush.bf16.msra.mxu0 %v206_v4 }
  0x20   :  { %127 = vmatpush.bf16.msra.mxu0 %v205_v5 }
  0x24   :  { %128 = vmatpush.bf16.msra.mxu0 %v204_v6 }
  0x28   :  { %129 = vmatpush.bf16.msra.mxu0 %v203_v7 }
  0x2b   :  { %130 = vmatmul.bf16.vlgmr.msra.gmra.mxu0 %v53_v9 }
  0xa8   :  { %v131_v11 = vpop.f32.mrf.mxu0 }
  0xa9   :  { %v132_v12 = vadd.f32 %v216_v10, %v131_v11 }
  0xab   :  { %v135_v14 = vmax.f32 %v132_v12, 0.0 }
  0xad   :  { %v140_v15 = vmul.f32 %v217_v13, %v135_v14 }
  0xaf   :  { %141 = vadd.xlane.f32.xlu0 %v140_v15 }
  0xb0   :  { %v133_v16 = vpop.f32.mrf.mxu0 }
 0x122   :  { %v142_v20 = vpop.xlane.xlu0 %141 }
 0x123   :  { %v145_v21 = vadd.f32 %v144_v18, %v142_v20 }
 0x125   :  { %v149_v22 = vperm.slane %v145_v21, %v148_v19 }
 0x127   :  { %152 = vst.msk [vmem:[#allocation8] sm:$0x1] %vm151_vm0, %v149_v22 }
 0x128   :  { %163 = dma.vmem_to_hbm [thread:$0]  %s159_s10, 16, %s161_s12, [#allocation5]  }
 0x129   :  { %294 = dma.done.wait [#allocation5], 16  }
 0x12a   :  { %295 = vsyncadd [#allocation5], 4294967280 }
 0x12b   :  { %168 = vsyncpa [#allocation4], 1 }
 0x12c   :  { %169 = vsyncpa [#allocation7], 1 }
 0x12d   :  { %170 = vsyncpa [#allocation5], 1 }

// kernel: tpu_custom_call.1
= control target key start
LH: loop header
LB: loop body
LE: loop exit
PB: predicated region body
PF: predicated region fallthrough
CT: control target
= control target key end

     0   :  { %11 = vsyncpa [#allocation4], 0  ;;  %s349_s0 = inlined_call_operand.hbm [shape: f32[8,128], index: 0, kind: input, shape index: {}]   ;;  %s350_s1 = inlined_call_operand.hbm [shape: bf16[128,128], index: 1, kind: input, shape index: {}]   ;;  %s351_s2 = inlined_call_operand.vmem [shape: f32[1,128], index: 2, kind: input, shape index: {}]   ;;  %s352_s3 = inlined_call_operand.vmem [shape: f32[1,128], index: 3, kind: input, shape index: {}]   ;;  %s353_s4 = inlined_call_operand.<no memory space> [shape: f32[1], index: 4, kind: input, shape index: {}]   ;;  %s354_s5 = inlined_call_operand.hbm [shape: f32[1,8], index: 5, kind: output, shape index: {}]  }
   0x1   :  { %12 = vsyncpa [#allocation7], 0 }
   0x2   :  { %13 = vsyncpa [#allocation5], 0  ;;  %s19_s20 = sshll.u32 %s349_s0, 4  ;;  %s296_s21 = smov [#allocation3]   ;;  %s20_s20 = int_to_ptr.hbm [resolvable:$true] %s19_s20 }
   0x3   :  { %s21_s22 = sshll.u32 %s296_s21, 4  ;;  %s29_s25 = sshll.u32 %s350_s1, 4  ;;  %s22_s22 = int_to_ptr.vmem [resolvable:$true] %s21_s22  ;;  %s30_s25 = int_to_ptr.hbm [resolvable:$true] %s29_s25 }
   0x4   :  { %24 = dma.hbm_to_vmem [thread:$0]  %s20_s20, 128, %s22_s22, [#allocation4]  }
   0x5   :  { %s297_s26 = smov [#allocation6]   ;;  %s298_s28 = smov 64  }
   0x6   :  { %s31_s27 = sshll.u32 %s297_s26, 4  ;;  %s299_s29 = smov 4   ;;  %s32_s27 = int_to_ptr.vmem [resolvable:$true] %s31_s27 }
   0x7   :  { %37 = dma.hbm_to_vmem [thread:$0]  %s30_s25, 1024, %s32_s27, [#allocation7], %s298_s28, %s298_s28, %s299_s29  }
   0x8   :  { %290 = dma.done.wait [#allocation4], 128  }
   0x9   :  { %291 = vsyncadd [#allocation4], 4294967168 }
   0xa   :  { %292 = dma.done.wait [#allocation7], 1024  }
   0xb   :  { %293 = vsyncadd [#allocation7], 4294966272  ;;  %v210_v0 = vld [vmem:[#allocation6 + $0x38] sm:$0xff]  ;;  %v209_v1 = vld [vmem:[#allocation6 + $0x30] sm:$0xff]  ;;  %v147_v17 = vlaneseq  ;;  %v144_v18 = vstv %s353_s4  ;;  %s300_s9 = smov [#allocation8]   ;;  %s160_s12 = sshll.u32 %s354_s5, 4  ;;  %s161_s12 = int_to_ptr.hbm [resolvable:$true] %s160_s12 }
   0xc   :  { %122 = vmatpush.bf16.msra.mxu0 %v210_v0  ;;  %v208_v2 = vld [vmem:[#allocation6 + $0x28] sm:$0xff]  ;;  %v207_v3 = vld [vmem:[#allocation6 + $0x20] sm:$0xff]  ;;  %v206_v4 = vld [vmem:[#allocation6 + $0x18] sm:$0xff]  ;;  %s158_s10 = sshll.u32 %s300_s9, 4  ;;  %vm151_vm0 = vcmask 57344   ;;  %s159_s10 = int_to_ptr.vmem [resolvable:$true] %s158_s10 }
   0xd   :  { %v205_v5 = vld [vmem:[#allocation6 + $0x10] sm:$0xff]  ;;  %v204_v6 = vld [vmem:[#allocation6 + $0x8] sm:$0xff]  ;;  %v203_v7 = vld [vmem:[#allocation6] sm:$0xff]  ;;  %v148_v19 = vand.u32 127, %v147_v17 }
   0xe   :  { %v52_v8 = vld [vmem:[#allocation3] sm:$0xff] }
   0xf   :  { %v53_v9 = vpack.c.bf16 %v52_v8, %v52_v8  ;;  %v216_v10 = vld [vmem:[%s351_s2] ss:$0 sm:$0xff] }
  0x10   :  { %123 = vmatpush.bf16.msra.mxu0 %v209_v1  ;;  %v217_v13 = vld [vmem:[%s352_s3] ss:$0 sm:$0xff] }
  0x14   :  { %124 = vmatpush.bf16.msra.mxu0 %v208_v2 }
  0x18   :  { %125 = vmatpush.bf16.msra.mxu0 %v207_v3 }
  0x1c   :  { %126 = vmatpush.bf16.msra.mxu0 %v206_v4 }
  0x20   :  { %127 = vmatpush.bf16.msra.mxu0 %v205_v5 }
  0x24   :  { %128 = vmatpush.bf16.msra.mxu0 %v204_v6 }
  0x28   :  { %129 = vmatpush.bf16.msra.mxu0 %v203_v7 }
  0x2b   :  { %130 = vmatmul.bf16.vlgmr.msra.gmra.mxu0 %v53_v9 }
  0xa8   :  { %v131_v11 = vpop.f32.mrf.mxu0 }
  0xa9   :  { %v132_v12 = vadd.f32 %v216_v10, %v131_v11 }
  0xab   :  { %v135_v14 = vmax.f32 %v132_v12, 0.0 }
  0xad   :  { %v140_v15 = vmul.f32 %v217_v13, %v135_v14 }
  0xaf   :  { %141 = vadd.xlane.f32.xlu0 %v140_v15 }
  0xb0   :  { %v133_v16 = vpop.f32.mrf.mxu0 }
 0x122   :  { %v142_v20 = vpop.xlane.xlu0 %141 }
 0x123   :  { %v145_v21 = vadd.f32 %v144_v18, %v142_v20 }
 0x125   :  { %v149_v22 = vperm.slane %v145_v21, %v148_v19 }
 0x127   :  { %152 = vst.msk [vmem:[#allocation8] sm:$0x1] %vm151_vm0, %v149_v22 }
 0x128   :  { %163 = dma.vmem_to_hbm [thread:$0]  %s159_s10, 16, %s161_s12, [#allocation5]  }
 0x129   :  { %294 = dma.done.wait [#allocation5], 16  }
 0x12a   :  { %295 = vsyncadd [#allocation5], 4294967280 }
 0x12b   :  { %168 = vsyncpa [#allocation4], 1 }
 0x12c   :  { %169 = vsyncpa [#allocation7], 1 }
 0x12d   :  { %170 = vsyncpa [#allocation5], 1 }

</bundles_post_ra>
